<compile_context>
chip_gen: v5e
topology: v5e:2x2
jax: 0.10.0
libtpu: 0.0.40
codegen_flags: <defaults>
</compile_context>

<pallas_src>
import functools

import jax
import jax.numpy as jnp
from jax import lax
from jax.experimental import pallas as pl
from jax.experimental.pallas import tpu as pltpu

# Plain Python scalars (NOT jnp arrays) so the kernel does not capture consts.
_BIG_I = 1 << 30             # "invalid index" sentinel (> any real point index)
_MAX_I32 = (1 << 31) - 1     # removal sentinel for packed keys
_ROW_BITS = 11               # low bits of the packed key that carry the local row
_ROW_MASK = (1 << _ROW_BITS) - 1          # 0x7FF -> candidate tile size <= 2048
_PAD_COORD = 1e18            # padded points sit here: squared distance ~3e36
                             # (assumes real coordinates are << 1e17 in magnitude)


def _round_up(x: int, m: int) -> int:
    return (x + m - 1) // m * m


def _knn_kernel(qt_ref, cand_ref, idx_ref, acc_d_ref, acc_i_ref, *, k: int):
    """One (query_tile, candidate_tile) grid step.

    qt_ref   : (D, TQ)    query coordinates (queries on lanes)
    cand_ref : (TC, D)    candidate coordinates (candidates on sublanes)
    idx_ref  : (k, TQ)    output neighbour indices (lane-dense, written at last c)
    acc_d    : (KPAD, TQ) running top-k quantized distances (persists over c)
    acc_i    : (KPAD, TQ) running top-k global indices      (persists over c)
    """
    c_step = pl.program_id(1)
    dim, tq = qt_ref.shape
    tc = cand_ref.shape[0]
    kpad = acc_d_ref.shape[0]

    # ---- init running top-k at the first candidate tile -------------------
    @pl.when(c_step == 0)
    def _init():
        acc_d_ref[...] = jnp.full((kpad, tq), jnp.inf, jnp.float32)
        acc_i_ref[...] = jnp.full((kpad, tq), _BIG_I, jnp.int32)

    qt = qt_ref[...].astype(jnp.float32)       # (D, TQ)
    cd = cand_ref[...].astype(jnp.float32)     # (TC, D)

    # ---- pairwise squared distances, explicit differences (VPU only) ------
    d = None
    for c in range(dim):                        # D is tiny (e.g. 3): unrolled
        diff = cd[:, c:c + 1] - qt[c:c + 1, :]  # (TC,1) - (1,TQ) -> (TC, TQ)
        sq = diff * diff
        d = sq if d is None else d + sq

    # ---- packed keys: high bits = distance, low 11 bits = local row -------
    # d >= 0, so its f32 bit pattern is order-preserving as int32; padded
    # candidates carry a huge (finite) distance and can never win.
    row = lax.broadcasted_iota(jnp.int32, (tc, 1), 0)
    key = (pltpu.bitcast(d, jnp.int32) & ~_ROW_MASK) | row       # (TC, TQ)

    # ---- stage 1: top-k of this candidate tile (ONE sublane-min per pick) -
    sel = []
    wkey = key
    for j in range(k):                          # k is small: unrolled
        mk = jnp.min(wkey, axis=0, keepdims=True)                # (1, TQ)
        sel.append(mk)
        if j + 1 < k:
            # keys are unique (row bits) -> removes exactly one row per query
            wkey = jnp.where(wkey == mk, _MAX_I32, wkey)
    cand_key = jnp.concatenate(sel, axis=0)                      # (k, TQ)
    cand_i = (cand_key & _ROW_MASK) + c_step * tc                # global indices
    cand_d = pltpu.bitcast(cand_key & ~_ROW_MASK, jnp.float32)   # quantized dists

    # ---- stage 2: merge with the running top-k (tiny (kpad+k, TQ) window) -
    w_d = jnp.concatenate([acc_d_ref[...], cand_d], axis=0)      # small
    w_i = jnp.concatenate([acc_i_ref[...], cand_i], axis=0)
    sel_d, sel_i = [], []
    for j in range(k):
        m = jnp.min(w_d, axis=0, keepdims=True)                              # (1, TQ)
        amin = jnp.min(jnp.where(w_d == m, w_i, _BIG_I), axis=0, keepdims=True)
        sel_d.append(m)
        sel_i.append(amin)
        if j + 1 < k:
            # remove the selected candidate by INDEX (robust to quantized ties)
            w_d = jnp.where(w_i == amin, jnp.inf, w_d)
    if kpad > k:
        sel_d.append(jnp.full((kpad - k, tq), jnp.inf, jnp.float32))
        sel_i.append(jnp.full((kpad - k, tq), _BIG_I, jnp.int32))
    new_d = jnp.concatenate(sel_d, axis=0)                       # (KPAD, TQ)
    new_i = jnp.concatenate(sel_i, axis=0)

    last = pl.num_programs(1) - 1

    @pl.when(c_step != last)
    def _carry():
        acc_d_ref[...] = new_d
        acc_i_ref[...] = new_i

    # ---- finalize: lane-dense (k, TQ) store at the last candidate tile ----
    @pl.when(c_step == last)
    def _store():
        idx_ref[...] = new_i[:k, :]


def knn_graph(pos: jax.Array, k: int, *, tq: int = 256, tc: int = 2048):
    """Pallas equivalent of KNNGraph.forward(pos, k).

    Returns (src, dst, nbr_idx, sq_dists):
      src/dst  : int32 (N*k,) edge endpoints, i.e. the arrays passed to
                 dgl.graph((nbr_idx, center_idx)) in the PyTorch module.
      nbr_idx  : int32 (N, k) k nearest neighbours (ascending distance; for
                 distinct points the 0-distance self index comes first).
      sq_dists : f32   (N, k) exact squared distances of the chosen neighbours.
    """
    n, dim = pos.shape
    if not (1 <= k <= n):
        raise ValueError(f"need 1 <= k <= n, got k={k}, n={n}")
    if tq % 128 != 0 or tq < 128:
        raise ValueError("tq must be a positive multiple of 128")
    if tc % 8 != 0 or not (8 <= tc <= _ROW_MASK + 1):
        raise ValueError(f"tc must be a multiple of 8 in [8, {_ROW_MASK + 1}] "
                         "(local row must fit in the packed-key low bits)")

    # ---- tile selection (clamped to the problem size) ----------------------
    tq_ = min(tq, _round_up(n, 128))          # query tile: multiple of 128 lanes
    tc_ = min(tc, _round_up(n, 8))            # candidate tile: multiple of 8 rows
    if k > tc_:
        raise ValueError(f"k={k} must not exceed the candidate tile size {tc_}")
    kpad = max(8, _round_up(k, 8))            # sublane-aligned accumulator

    n_pad_q = _round_up(n, tq_)
    n_pad_c = _round_up(n, tc_)
    n_pad = max(n_pad_q, n_pad_c)

    # ---- pad + build the two views of pos ----------------------------------
    pos32 = pos.astype(jnp.float32)
    if n_pad != n:
        # Padded points live at a huge coordinate; their distance to any real
        # point (~3e36, finite) can never enter a real point's top-k, so the
        # kernel needs no per-step validity mask.
        pos_p = jnp.full((n_pad, dim), _PAD_COORD, jnp.float32).at[:n, :].set(pos32)
    else:
        pos_p = pos32
    pos_t = pos_p.T                            # (D, N_pad): queries on lanes

    grid = (n_pad_q // tq_, n_pad_c // tc_)
    kernel = functools.partial(_knn_kernel, k=k)

    idx_t = pl.pallas_call(
        kernel,
        out_shape=jax.ShapeDtypeStruct((k, n_pad_q), jnp.int32),
        grid=grid,
        in_specs=[
            # query coordinates (D, TQ): revisited along the candidate axis
            pl.BlockSpec((dim, tq_), lambda qi, ci: (0, qi)),
            # candidate coordinates (TC, D): streamed (double-buffered) along ci
            pl.BlockSpec((tc_, dim), lambda qi, ci: (ci, 0)),
        ],
        out_specs=pl.BlockSpec((k, tq_), lambda qi, ci: (0, qi)),
        scratch_shapes=[
            pltpu.VMEM((kpad, tq_), jnp.float32),   # running top-k distances
            pltpu.VMEM((kpad, tq_), jnp.int32),     # running top-k indices
        ],
        compiler_params=pltpu.CompilerParams(
            dimension_semantics=("parallel", "arbitrary")),
    )(pos_t, pos_p)

    # ---- plain-JAX glue: un-pad, transpose, build edge lists ---------------
    nbr_idx = idx_t[:, :n].T                        # (N, k)
    # exact squared distances re-derived from the indices (in-kernel packed-key
    # distances are quantized by ~2^-12 relative; indices are exact)
    sq_dists = jnp.sum((pos32[nbr_idx] - pos32[:, None, :]) ** 2, axis=-1)
    center_idx = jnp.broadcast_to(
        jnp.arange(n, dtype=jnp.int32)[:, None], (n, k))
    # mask (nbr_idx != -1) is all-True here (query set == reference set, k<=N)
    src = nbr_idx.reshape(-1)                       # neighbour -> center edges
    dst = center_idx.reshape(-1)
    return src, dst, nbr_idx, sq_dists


if __name__ == "__main__":
    import numpy as np

    key = jax.random.PRNGKey(0)

    def run_and_check(n, dim, k, **tiles):
        kk = jax.random.fold_in(key, n)
        pos = jax.random.normal(kk, (n, dim), dtype=jnp.float32)
        src, dst, nbr_idx, sq_d = knn_graph(pos, k, **tiles)
        jax.block_until_ready((src, dst, nbr_idx, sq_d))

        p = np.asarray(pos, dtype=np.float64)
        dref = ((p[:, None, :] - p[None, :, :]) ** 2).sum(-1)
        got = np.asarray(nbr_idx)
        gd = np.asarray(sq_d, dtype=np.float64)
        assert got.shape == (n, k) and gd.shape == (n, k)

        kth = np.sort(dref, axis=-1)[:, k - 1]      # k-th smallest ref distance
        for i in range(n):
            gi = got[i]
            assert len(set(gi.tolist())) == k, f"duplicate neighbour, row {i}"
            assert (gi >= 0).all() and (gi < n).all(), f"index out of range, row {i}"
            # every returned neighbour lies within the true k-NN ball
            # (f32 + ~2^-12 packed-key quantization tolerance)
            assert dref[i, gi].max() <= kth[i] * (1.0 + 1e-3) + 1e-6, f"row {i}"
            # ascending distances up to key quantization (return_sorted=True)
            assert np.all(gd[i, 1:] >= gd[i, :-1] * (1.0 - 1e-3) - 1e-6), \
                f"row {i} not sorted"
            # exact distances of the chosen neighbours match the reference
            np.testing.assert_allclose(gd[i], dref[i, gi], rtol=1e-4, atol=1e-5)
        # self is the 0-distance nearest neighbour (distinct points)
        assert (got[:, 0] == np.arange(n)).all()
        # edge lists
        assert src.shape == (n * k,) and dst.shape == (n * k,)
        assert (np.asarray(dst) == np.repeat(np.arange(n), k)).all()
        assert (np.asarray(src) == got.reshape(-1)).all()

    # tiny single-cell case: grid (1,1), candidate tile = 16 real points
    run_and_check(16, 3, 4)
    # default tiles: 2 query tiles (megacore-friendly), padded candidate tile
    run_and_check(300, 3, 8)
    # small tiles: grid (3,3), exercises the accumulator merge across c tiles
    run_and_check(300, 3, 8, tq=128, tc=128)

    print("KERNEL_OK")
</pallas_src>

<mosaic_0001>
module attributes {stable_mosaic.version = 11 : i64} {
  func.func @_knn_kernel(%arg0: i32, %arg1: i32, %arg2: memref<3x128xf32, #tpu.memory_space<vmem>>, %arg3: memref<16x3xf32, #tpu.memory_space<vmem>>, %arg4: memref<4x128xi32, #tpu.memory_space<vmem>>, %arg5: memref<8x128xf32, #tpu.memory_space<vmem>>, %arg6: memref<8x128xi32, #tpu.memory_space<vmem>>) attributes {dimension_semantics = [#tpu.dimension_semantics<parallel>, #tpu.dimension_semantics<arbitrary>], iteration_bounds = array<i64: 1, 1>, scalar_prefetch = 0 : i64, scratch_operands = 2 : i64, tpu.core_type = #tpu.core_type<tc>, window_params = [{transform_indices = @transform_0, window_bounds = array<i64: 3, 128>}, {transform_indices = @transform_1, window_bounds = array<i64: 16, 3>}, {transform_indices = @transform_2, window_bounds = array<i64: 4, 128>}]} {
    %c0_i32 = arith.constant 0 : i32
    %0 = arith.cmpi eq, %arg1, %c0_i32 : i32
    %1 = arith.extui %0 : i1 to i32
    %c0_i32_0 = arith.constant 0 : i32
    %2 = arith.cmpi ne, %1, %c0_i32_0 : i32
    scf.if %2 {
      %cst_34 = arith.constant 0x7F800000 : f32
      %118 = vector.broadcast %cst_34 : f32 to vector<8x128xf32>
      %c0_35 = arith.constant 0 : index
      %c0_36 = arith.constant 0 : index
      %119 = vector.load %arg5[%c0_35, %c0_36] : memref<8x128xf32, #tpu.memory_space<vmem>>, vector<8x128xf32>
      tpu.vector_store %arg5[%c0_35, %c0_36], %118 {strides = array<i32>} : memref<8x128xf32, #tpu.memory_space<vmem>>, vector<8x128xf32>,
      %c1073741824_i32_37 = arith.constant 1073741824 : i32
      %120 = vector.broadcast %c1073741824_i32_37 : i32 to vector<8x128xi32>
      %c0_38 = arith.constant 0 : index
      %c0_39 = arith.constant 0 : index
      %121 = vector.load %arg6[%c0_38, %c0_39] : memref<8x128xi32, #tpu.memory_space<vmem>>, vector<8x128xi32>
      tpu.vector_store %arg6[%c0_38, %c0_39], %120 {strides = array<i32>} : memref<8x128xi32, #tpu.memory_space<vmem>>, vector<8x128xi32>,
    } else {
    }
    %c0 = arith.constant 0 : index
    %c0_1 = arith.constant 0 : index
    %3 = vector.load %arg2[%c0, %c0_1] : memref<3x128xf32, #tpu.memory_space<vmem>>, vector<3x128xf32>
    %c0_2 = arith.constant 0 : index
    %c0_3 = arith.constant 0 : index
    %4 = vector.load %arg3[%c0_2, %c0_3] : memref<16x3xf32, #tpu.memory_space<vmem>>, vector<16x3xf32>
    %5 = vector.extract_strided_slice %4 {offsets = [0, 0], sizes = [16, 1], strides = [1, 1]} : vector<16x3xf32> to vector<16x1xf32>
    %6 = vector.extract_strided_slice %3 {offsets = [0, 0], sizes = [1, 128], strides = [1, 1]} : vector<3x128xf32> to vector<1x128xf32>
    %7 = vector.broadcast %5 : vector<16x1xf32> to vector<16x128xf32>
    %8 = vector.broadcast %6 : vector<1x128xf32> to vector<16x128xf32>
    %9 = arith.subf %7, %8 : vector<16x128xf32>
    %10 = arith.mulf %9, %9 : vector<16x128xf32>
    %11 = vector.extract_strided_slice %4 {offsets = [0, 1], sizes = [16, 1], strides = [1, 1]} : vector<16x3xf32> to vector<16x1xf32>
    %12 = vector.extract_strided_slice %3 {offsets = [1, 0], sizes = [1, 128], strides = [1, 1]} : vector<3x128xf32> to vector<1x128xf32>
    %13 = vector.broadcast %11 : vector<16x1xf32> to vector<16x128xf32>
    %14 = vector.broadcast %12 : vector<1x128xf32> to vector<16x128xf32>
    %15 = arith.subf %13, %14 : vector<16x128xf32>
    %16 = arith.mulf %15, %15 : vector<16x128xf32>
    %17 = arith.addf %10, %16 : vector<16x128xf32>
    %18 = vector.extract_strided_slice %4 {offsets = [0, 2], sizes = [16, 1], strides = [1, 1]} : vector<16x3xf32> to vector<16x1xf32>
    %19 = vector.extract_strided_slice %3 {offsets = [2, 0], sizes = [1, 128], strides = [1, 1]} : vector<3x128xf32> to vector<1x128xf32>
    %20 = vector.broadcast %18 : vector<16x1xf32> to vector<16x128xf32>
    %21 = vector.broadcast %19 : vector<1x128xf32> to vector<16x128xf32>
    %22 = arith.subf %20, %21 : vector<16x128xf32>
    %23 = arith.mulf %22, %22 : vector<16x128xf32>
    %24 = arith.addf %17, %23 : vector<16x128xf32>
    %25 = tpu.iota {dimensions = array<i32: 0>} : vector<16x1xi32>
    %26 = tpu.bitcast %24 : vector<16x128xf32> -> vector<16x128xi32>
    %c-2048_i32 = arith.constant -2048 : i32
    %27 = vector.broadcast %c-2048_i32 : i32 to vector<16x128xi32>
    %28 = arith.andi %26, %27 : vector<16x128xi32>
    %29 = vector.broadcast %25 : vector<16x1xi32> to vector<16x128xi32>
    %30 = arith.ori %28, %29 : vector<16x128xi32>
    %cst = arith.constant dense<2147483647> : vector<128xi32>
    %31 = vector.multi_reduction <minsi>, %30, %cst [0] : vector<16x128xi32> to vector<128xi32>
    %32 = vector.shape_cast %31 : vector<128xi32> to vector<1x128xi32>
    %33 = vector.broadcast %32 : vector<1x128xi32> to vector<16x128xi32>
    %34 = arith.cmpi eq, %30, %33 : vector<16x128xi32>
    %c2147483647_i32 = arith.constant 2147483647 : i32
    %35 = vector.broadcast %c2147483647_i32 : i32 to vector<16x128xi32>
    %36 = arith.select %34, %35, %30 : vector<16x128xi1>, vector<16x128xi32>
    %cst_4 = arith.constant dense<2147483647> : vector<128xi32>
    %37 = vector.multi_reduction <minsi>, %36, %cst_4 [0] : vector<16x128xi32> to vector<128xi32>
    %38 = vector.shape_cast %37 : vector<128xi32> to vector<1x128xi32>
    %39 = vector.broadcast %38 : vector<1x128xi32> to vector<16x128xi32>
    %40 = arith.cmpi eq, %36, %39 : vector<16x128xi32>
    %c2147483647_i32_5 = arith.constant 2147483647 : i32
    %41 = vector.broadcast %c2147483647_i32_5 : i32 to vector<16x128xi32>
    %42 = arith.select %40, %41, %36 : vector<16x128xi1>, vector<16x128xi32>
    %cst_6 = arith.constant dense<2147483647> : vector<128xi32>
    %43 = vector.multi_reduction <minsi>, %42, %cst_6 [0] : vector<16x128xi32> to vector<128xi32>
    %44 = vector.shape_cast %43 : vector<128xi32> to vector<1x128xi32>
    %45 = vector.broadcast %44 : vector<1x128xi32> to vector<16x128xi32>
    %46 = arith.cmpi eq, %42, %45 : vector<16x128xi32>
    %c2147483647_i32_7 = arith.constant 2147483647 : i32
    %47 = vector.broadcast %c2147483647_i32_7 : i32 to vector<16x128xi32>
    %48 = arith.select %46, %47, %42 : vector<16x128xi1>, vector<16x128xi32>
    %cst_8 = arith.constant dense<2147483647> : vector<128xi32>
    %49 = vector.multi_reduction <minsi>, %48, %cst_8 [0] : vector<16x128xi32> to vector<128xi32>
    %50 = vector.shape_cast %49 : vector<128xi32> to vector<1x128xi32>
    %51 = tpu.concatenate %32, %38, %44, %50 in 0 : vector<1x128xi32>, vector<1x128xi32>, vector<1x128xi32>, vector<1x128xi32> -> vector<4x128xi32>
    %c2047_i32 = arith.constant 2047 : i32
    %52 = vector.broadcast %c2047_i32 : i32 to vector<4x128xi32>
    %53 = arith.andi %51, %52 : vector<4x128xi32>
    %c16_i32 = arith.constant 16 : i32
    %54 = arith.muli %arg1, %c16_i32 : i32
    %55 = vector.broadcast %54 : i32 to vector<4x128xi32>
    %56 = arith.addi %53, %55 : vector<4x128xi32>
    %c-2048_i32_9 = arith.constant -2048 : i32
    %57 = vector.broadcast %c-2048_i32_9 : i32 to vector<4x128xi32>
    %58 = arith.andi %51, %57 : vector<4x128xi32>
    %59 = tpu.bitcast %58 : vector<4x128xi32> -> vector<4x128xf32>
    %c0_10 = arith.constant 0 : index
    %c0_11 = arith.constant 0 : index
    %60 = vector.load %arg5[%c0_10, %c0_11] : memref<8x128xf32, #tpu.memory_space<vmem>>, vector<8x128xf32>
    %61 = tpu.concatenate %60, %59 in 0 : vector<8x128xf32>, vector<4x128xf32> -> vector<12x128xf32>
    %c0_12 = arith.constant 0 : index
    %c0_13 = arith.constant 0 : index
    %62 = vector.load %arg6[%c0_12, %c0_13] : memref<8x128xi32, #tpu.memory_space<vmem>>, vector<8x128xi32>
    %63 = tpu.concatenate %62, %56 in 0 : vector<8x128xi32>, vector<4x128xi32> -> vector<12x128xi32>
    %cst_14 = arith.constant dense<0x7F800000> : vector<128xf32>
    %64 = vector.multi_reduction <minimumf>, %61, %cst_14 [0] : vector<12x128xf32> to vector<128xf32>
    %65 = vector.shape_cast %64 : vector<128xf32> to vector<1x128xf32>
    %66 = vector.broadcast %65 : vector<1x128xf32> to vector<12x128xf32>
    %67 = arith.cmpf oeq, %61, %66 : vector<12x128xf32>
    %c1073741824_i32 = arith.constant 1073741824 : i32
    %68 = vector.broadcast %c1073741824_i32 : i32 to vector<12x128xi32>
    %69 = arith.select %67, %63, %68 : vector<12x128xi1>, vector<12x128xi32>
    %cst_15 = arith.constant dense<2147483647> : vector<128xi32>
    %70 = vector.multi_reduction <minsi>, %69, %cst_15 [0] : vector<12x128xi32> to vector<128xi32>
    %71 = vector.shape_cast %70 : vector<128xi32> to vector<1x128xi32>
    %72 = vector.broadcast %71 : vector<1x128xi32> to vector<12x128xi32>
    %73 = arith.cmpi eq, %63, %72 : vector<12x128xi32>
    %cst_16 = arith.constant 0x7F800000 : f32
    %74 = vector.broadcast %cst_16 : f32 to vector<12x128xf32>
    %75 = arith.select %73, %74, %61 : vector<12x128xi1>, vector<12x128xf32>
    %cst_17 = arith.constant dense<0x7F800000> : vector<128xf32>
    %76 = vector.multi_reduction <minimumf>, %75, %cst_17 [0] : vector<12x128xf32> to vector<128xf32>
    %77 = vector.shape_cast %76 : vector<128xf32> to vector<1x128xf32>
    %78 = vector.broadcast %77 : vector<1x128xf32> to vector<12x128xf32>
    %79 = arith.cmpf oeq, %75, %78 : vector<12x128xf32>
    %c1073741824_i32_18 = arith.constant 1073741824 : i32
    %80 = vector.broadcast %c1073741824_i32_18 : i32 to vector<12x128xi32>
    %81 = arith.select %79, %63, %80 : vector<12x128xi1>, vector<12x128xi32>
    %cst_19 = arith.constant dense<2147483647> : vector<128xi32>
    %82 = vector.multi_reduction <minsi>, %81, %cst_19 [0] : vector<12x128xi32> to vector<128xi32>
    %83 = vector.shape_cast %82 : vector<128xi32> to vector<1x128xi32>
    %84 = vector.broadcast %83 : vector<1x128xi32> to vector<12x128xi32>
    %85 = arith.cmpi eq, %63, %84 : vector<12x128xi32>
    %cst_20 = arith.constant 0x7F800000 : f32
    %86 = vector.broadcast %cst_20 : f32 to vector<12x128xf32>
    %87 = arith.select %85, %86, %75 : vector<12x128xi1>, vector<12x128xf32>
    %cst_21 = arith.constant dense<0x7F800000> : vector<128xf32>
    %88 = vector.multi_reduction <minimumf>, %87, %cst_21 [0] : vector<12x128xf32> to vector<128xf32>
    %89 = vector.shape_cast %88 : vector<128xf32> to vector<1x128xf32>
    %90 = vector.broadcast %89 : vector<1x128xf32> to vector<12x128xf32>
    %91 = arith.cmpf oeq, %87, %90 : vector<12x128xf32>
    %c1073741824_i32_22 = arith.constant 1073741824 : i32
    %92 = vector.broadcast %c1073741824_i32_22 : i32 to vector<12x128xi32>
    %93 = arith.select %91, %63, %92 : vector<12x128xi1>, vector<12x128xi32>
    %cst_23 = arith.constant dense<2147483647> : vector<128xi32>
    %94 = vector.multi_reduction <minsi>, %93, %cst_23 [0] : vector<12x128xi32> to vector<128xi32>
    %95 = vector.shape_cast %94 : vector<128xi32> to vector<1x128xi32>
    %96 = vector.broadcast %95 : vector<1x128xi32> to vector<12x128xi32>
    %97 = arith.cmpi eq, %63, %96 : vector<12x128xi32>
    %cst_24 = arith.constant 0x7F800000 : f32
    %98 = vector.broadcast %cst_24 : f32 to vector<12x128xf32>
    %99 = arith.select %97, %98, %87 : vector<12x128xi1>, vector<12x128xf32>
    %cst_25 = arith.constant dense<0x7F800000> : vector<128xf32>
    %100 = vector.multi_reduction <minimumf>, %99, %cst_25 [0] : vector<12x128xf32> to vector<128xf32>
    %101 = vector.shape_cast %100 : vector<128xf32> to vector<1x128xf32>
    %102 = vector.broadcast %101 : vector<1x128xf32> to vector<12x128xf32>
    %103 = arith.cmpf oeq, %99, %102 : vector<12x128xf32>
    %c1073741824_i32_26 = arith.constant 1073741824 : i32
    %104 = vector.broadcast %c1073741824_i32_26 : i32 to vector<12x128xi32>
    %105 = arith.select %103, %63, %104 : vector<12x128xi1>, vector<12x128xi32>
    %cst_27 = arith.constant dense<2147483647> : vector<128xi32>
    %106 = vector.multi_reduction <minsi>, %105, %cst_27 [0] : vector<12x128xi32> to vector<128xi32>
    %107 = vector.shape_cast %106 : vector<128xi32> to vector<1x128xi32>
    %cst_28 = arith.constant 0x7F800000 : f32
    %108 = vector.broadcast %cst_28 : f32 to vector<4x128xf32>
    %c1073741824_i32_29 = arith.constant 1073741824 : i32
    %109 = vector.broadcast %c1073741824_i32_29 : i32 to vector<4x128xi32>
    %110 = tpu.concatenate %65, %77, %89, %101, %108 in 0 : vector<1x128xf32>, vector<1x128xf32>, vector<1x128xf32>, vector<1x128xf32>, vector<4x128xf32> -> vector<8x128xf32>
    %111 = tpu.concatenate %71, %83, %95, %107, %109 in 0 : vector<1x128xi32>, vector<1x128xi32>, vector<1x128xi32>, vector<1x128xi32>, vector<4x128xi32> -> vector<8x128xi32>
    %c0_i32_30 = arith.constant 0 : i32
    %112 = arith.cmpi ne, %arg1, %c0_i32_30 : i32
    %113 = arith.extui %112 : i1 to i32
    %c0_i32_31 = arith.constant 0 : i32
    %114 = arith.cmpi ne, %113, %c0_i32_31 : i32
    scf.if %114 {
      %c0_34 = arith.constant 0 : index
      %c0_35 = arith.constant 0 : index
      %118 = vector.load %arg5[%c0_34, %c0_35] : memref<8x128xf32, #tpu.memory_space<vmem>>, vector<8x128xf32>
      tpu.vector_store %arg5[%c0_34, %c0_35], %110 {strides = array<i32>} : memref<8x128xf32, #tpu.memory_space<vmem>>, vector<8x128xf32>,
      %c0_36 = arith.constant 0 : index
      %c0_37 = arith.constant 0 : index
      %119 = vector.load %arg6[%c0_36, %c0_37] : memref<8x128xi32, #tpu.memory_space<vmem>>, vector<8x128xi32>
      tpu.vector_store %arg6[%c0_36, %c0_37], %111 {strides = array<i32>} : memref<8x128xi32, #tpu.memory_space<vmem>>, vector<8x128xi32>,
    } else {
    }
    %c0_i32_32 = arith.constant 0 : i32
    %115 = arith.cmpi eq, %arg1, %c0_i32_32 : i32
    %116 = arith.extui %115 : i1 to i32
    %c0_i32_33 = arith.constant 0 : i32
    %117 = arith.cmpi ne, %116, %c0_i32_33 : i32
    scf.if %117 {
      %118 = vector.extract_strided_slice %111 {offsets = [0, 0], sizes = [4, 128], strides = [1, 1]} : vector<8x128xi32> to vector<4x128xi32>
      %c0_34 = arith.constant 0 : index
      %c0_35 = arith.constant 0 : index
      %119 = vector.load %arg4[%c0_34, %c0_35] : memref<4x128xi32, #tpu.memory_space<vmem>>, vector<4x128xi32>
      tpu.vector_store %arg4[%c0_34, %c0_35], %118 {strides = array<i32>} : memref<4x128xi32, #tpu.memory_space<vmem>>, vector<4x128xi32>,
    } else {
    }
    return
  }
  func.func @transform_0(%arg0: i32, %arg1: i32) -> (i32, i32) {
    %c0_i32 = arith.constant 0 : i32
    %c0_i32_0 = arith.constant 0 : i32
    return %c0_i32, %arg0 : i32, i32
  }
  func.func @transform_1(%arg0: i32, %arg1: i32) -> (i32, i32) {
    %c0_i32 = arith.constant 0 : i32
    %c0_i32_0 = arith.constant 0 : i32
    return %arg1, %c0_i32 : i32, i32
  }
  func.func @transform_2(%arg0: i32, %arg1: i32) -> (i32, i32) {
    %c0_i32 = arith.constant 0 : i32
    %c0_i32_0 = arith.constant 0 : i32
    return %c0_i32, %arg0 : i32, i32
  }
}

</mosaic_0001>

<bundles_post_ra>
// kernel: tpu_custom_call.1
= control target key start
LH: loop header
LB: loop body
LE: loop exit
PB: predicated region body
PF: predicated region fallthrough
CT: control target
= control target key end

     0   :  { %v333_v1 = vmov 1   ;;  %v334_v2 = vmov 0   ;;  %s392_s0 = inlined_call_operand.vmem [shape: f32[3,128], index: 0, kind: input, shape index: {}]   ;;  %s393_s1 = inlined_call_operand.vmem [shape: f32[128,3], index: 1, kind: input, shape index: {}]   ;;  %s394_s2 = inlined_call_operand.hbm [shape: s32[4,128], index: 2, kind: output, shape index: {}]  }
   0x1   :  { %v19_v0 = vld [vmem:[%s393_s1] sm:$0xff]  ;;  %304 = vset.pattern.permute.xlu1 %v333_v1  ;;  %303 = vset.pattern.permute.xlu0 %v334_v2 }
   0x2   :  { %7 = vsyncpa [#allocation5], 0  ;;  %37 = vperm.xlu1 %304, %v19_v0   ;;  %23 = vperm.xlu0 %303, %v19_v0   ;;  %v335_v3 = vmov 2   ;;  %v20_v4 = vld [vmem:[%s393_s1 + $0x8] sm:$0xff]  ;;  %v18_v5 = vld [vmem:[%s392_s0] sm:$0x7]  ;;  %v66_v22 = vlaneseq }
   0x3   :  { %305 = vset.pattern.permute.xlu2 %v335_v3  ;;  %v44_v7 = vperm.slane %v18_v5, 1  ;;  %v31_v8 = vperm.slane %v18_v5, 0  ;;  %v59_v9 = vperm.slane %v18_v5, 2  ;;  %s336_s0 = smov [#allocation4]   ;;  %s279_s17 = sshll.u32 %s394_s2, 4  ;;  %s280_s17 = int_to_ptr.hbm [resolvable:$true] %s279_s17 }
   0x4   :  { %52 = vperm.xlu2 %305, %v19_v0   ;;  %v67_v29 = vshrl.u32 %v66_v22, 7  ;;  %s277_s1 = sshll.u32 %s336_s0, 4  ;;  %s278_s1 = int_to_ptr.vmem [resolvable:$true] %s277_s1 }
   0x6   :  { %v68_v33 = vadd.s32 8, %v67_v29 }
   0xa   :  { %41 = vperm.xlu1 %304, %v20_v4   ;;  %28 = vperm.xlu0 %303, %v20_v4  }
   0xc   :  { %56 = vperm.xlu2 %305, %v20_v4  }
  0x12   :  { %306 = vset.pattern.permute.xlu0 %v335_v3 }
  0x5e   :  { %v53_v6 = vpop.permute.xlu2 %52 }
  0x5f   :  { %v60_v14 = vsub.f32 %v53_v6, %v59_v9 }
  0x61   :  { %v62_v18 = vmul.f32 %v60_v14, %v60_v14 }
  0x66   :  { %v57_v17 = vpop.permute.xlu2 %56 }
  0x67   :  { %v61_v23 = vsub.f32 %v57_v17, %v59_v9 }
  0x69   :  { %v63_v30 = vmul.f32 %v61_v23, %v61_v23 }
  0x74   :  { %v38_v10 = vpop.permute.xlu1 %37  ;;  %v24_v11 = vpop.permute.xlu0 %23 }
  0x75   :  { %v45_v12 = vsub.f32 %v38_v10, %v44_v7  ;;  %v32_v13 = vsub.f32 %v24_v11, %v31_v8 }
  0x77   :  { %v47_v15 = vmul.f32 %v45_v12, %v45_v12  ;;  %v34_v16 = vmul.f32 %v32_v13, %v32_v13 }
  0x79   :  { %v49_v19 = vadd.f32 %v47_v15, %v34_v16 }
  0x7b   :  { %v64_v26 = vadd.f32 %v62_v18, %v49_v19 }
  0x7c   :  { %v42_v20 = vpop.permute.xlu1 %41  ;;  %v29_v21 = vpop.permute.xlu0 %28 }
  0x7d   :  { %v46_v24 = vsub.f32 %v42_v20, %v44_v7  ;;  %v33_v25 = vsub.f32 %v29_v21, %v31_v8  ;;  %v71_v32 = vand.u32 4294965248, %v64_v26 }
  0x7f   :  { %v48_v27 = vmul.f32 %v46_v24, %v46_v24  ;;  %v35_v28 = vmul.f32 %v33_v25, %v33_v25  ;;  %v73_v36 = vor.u32 %v71_v32, %v67_v29 }
  0x81   :  { %v50_v31 = vadd.f32 %v48_v27, %v35_v28 }
  0x83   :  { %v65_v34 = vadd.f32 %v63_v30, %v50_v31 }
  0x85   :  { %v72_v35 = vand.u32 4294965248, %v65_v34 }
  0x87   :  { %v74_v37 = vor.u32 %v72_v35, %v68_v33 }
  0x89   :  { %vm75_vm0 = vcmp.lt.s32.totalorder %v73_v36, %v74_v37 }
  0x8a   :  { %v76_v38 = vsel %vm75_vm0, %v73_v36, %v74_v37 }
  0x8b   :  { %v77_v39 = vrot.slane %v76_v38, 4 }
  0x8d   :  { %vm78_vm1 = vcmp.lt.s32.totalorder %v76_v38, %v77_v39 }
  0x8e   :  { %v79_v40 = vsel %vm78_vm1, %v76_v38, %v77_v39 }
  0x8f   :  { %v80_v41 = vrot.slane %v79_v40, 2 }
  0x91   :  { %vm81_vm2 = vcmp.lt.s32.totalorder %v79_v40, %v80_v41 }
  0x92   :  { %v82_v42 = vsel %vm81_vm2, %v79_v40, %v80_v41 }
  0x93   :  { %v83_v43 = vrot.slane %v82_v42, 1 }
  0x95   :  { %vm84_vm3 = vcmp.lt.s32.totalorder %v82_v42, %v83_v43 }
  0x96   :  { %v85_v44 = vsel %vm84_vm3, %v82_v42, %v83_v43 }
  0x97   :  { %vm86_vm4 = vcmp.eq.s32.totalorder %v73_v36, %v85_v44  ;;  %vm87_vm5 = vcmp.eq.s32.totalorder %v74_v37, %v85_v44 }
  0x98   :  { %v88_v45 = vsel %vm86_vm4, 2147483647, %v73_v36  ;;  %v89_v46 = vsel %vm87_vm5, 2147483647, %v74_v37  ;;  %vm131_vm5 = vcmask 1040384  }
  0x99   :  { %vm90_vm6 = vcmp.lt.s32.totalorder %v88_v45, %v89_v46 }
  0x9a   :  { %v91_v47 = vsel %vm90_vm6, %v88_v45, %v89_v46  ;;  %vm133_vm6 = vcmask 1041408  }
  0x9b   :  { %v92_v48 = vrot.slane %v91_v47, 4 }
  0x9d   :  { %vm93_vm7 = vcmp.lt.s32.totalorder %v91_v47, %v92_v48 }
  0x9e   :  { %v94_v49 = vsel %vm93_vm7, %v91_v47, %v92_v48  ;;  %vm135_vm7 = vcmask 1042432  }
  0x9f   :  { %v95_v50 = vrot.slane %v94_v49, 2 }
  0xa1   :  { %vm96_vm8 = vcmp.lt.s32.totalorder %v94_v49, %v95_v50 }
  0xa2   :  { %v97_v51 = vsel %vm96_vm8, %v94_v49, %v95_v50 }
  0xa3   :  { %v98_v52 = vrot.slane %v97_v51, 1 }
  0xa5   :  { %vm99_vm9 = vcmp.lt.s32.totalorder %v97_v51, %v98_v52 }
  0xa6   :  { %v100_v53 = vsel %vm99_vm9, %v97_v51, %v98_v52  ;;  %vm145_vm9 = vcmask 1043456  }
  0xa7   :  { %vm101_vm10 = vcmp.eq.s32.totalorder %v88_v45, %v100_v53  ;;  %vm102_vm11 = vcmp.eq.s32.totalorder %v89_v46, %v100_v53  ;;  %v132_v7 = vsel %vm131_vm5, %v85_v44, %v100_v53 }
  0xa8   :  { %v103_v54 = vsel %vm101_vm10, 2147483647, %v88_v45  ;;  %v104_v55 = vsel %vm102_vm11, 2147483647, %v89_v46 }
  0xa9   :  { %vm105_vm12 = vcmp.lt.s32.totalorder %v103_v54, %v104_v55 }
  0xaa   :  { %v106_v56 = vsel %vm105_vm12, %v103_v54, %v104_v55 }
  0xab   :  { %v107_v57 = vrot.slane %v106_v56, 4 }
  0xad   :  { %vm108_vm13 = vcmp.lt.s32.totalorder %v106_v56, %v107_v57 }
  0xae   :  { %v109_v58 = vsel %vm108_vm13, %v106_v56, %v107_v57 }
  0xaf   :  { %v110_v59 = vrot.slane %v109_v58, 2 }
  0xb1   :  { %vm111_vm14 = vcmp.lt.s32.totalorder %v109_v58, %v110_v59 }
  0xb2   :  { %v112_v60 = vsel %vm111_vm14, %v109_v58, %v110_v59 }
  0xb3   :  { %v113_v61 = vrot.slane %v112_v60, 1 }
  0xb5   :  { %vm114_vm15 = vcmp.lt.s32.totalorder %v112_v60, %v113_v61 }
  0xb6   :  { %v115_v62 = vsel %vm114_vm15, %v112_v60, %v113_v61 }
  0xb7   :  { %vm116_vm0 = vcmp.eq.s32.totalorder %v103_v54, %v115_v62  ;;  %vm117_vm1 = vcmp.eq.s32.totalorder %v104_v55, %v115_v62  ;;  %v134_v9 = vsel %vm133_vm6, %v132_v7, %v115_v62 }
  0xb8   :  { %v118_v63 = vsel %vm116_vm0, 2147483647, %v103_v54  ;;  %v119_v0 = vsel %vm117_vm1, 2147483647, %v104_v55 }
  0xb9   :  { %vm120_vm2 = vcmp.lt.s32.totalorder %v118_v63, %v119_v0 }
  0xba   :  { %v121_v1 = vsel %vm120_vm2, %v118_v63, %v119_v0 }
  0xbb   :  { %v122_v2 = vrot.slane %v121_v1, 4 }
  0xbd   :  { %vm123_vm3 = vcmp.lt.s32.totalorder %v121_v1, %v122_v2 }
  0xbe   :  { %v124_v3 = vsel %vm123_vm3, %v121_v1, %v122_v2 }
  0xbf   :  { %v125_v4 = vrot.slane %v124_v3, 2 }
  0xc1   :  { %vm126_vm4 = vcmp.lt.s32.totalorder %v124_v3, %v125_v4 }
  0xc2   :  { %v127_v5 = vsel %vm126_vm4, %v124_v3, %v125_v4 }
  0xc3   :  { %v128_v6 = vrot.slane %v127_v5, 1 }
  0xc5   :  { %vm129_vm8 = vcmp.lt.s32.totalorder %v127_v5, %v128_v6 }
  0xc6   :  { %v130_v8 = vsel %vm129_vm8, %v127_v5, %v128_v6 }
  0xc7   :  { %v136_v10 = vsel %vm135_vm7, %v134_v9, %v130_v8 }
  0xc8   :  { %v141_v11 = vand.u32 4294965248, %v136_v10  ;;  %v365_v19 = vand.u32 2047, %v136_v10 }
  0xca   :  { %v146_v12 = vsel %vm145_vm9, %v141_v11, inf }
  0xcb   :  { %v148_v13 = vrot.slane %v146_v12, 4 }
  0xcd   :  { %v149_v14 = vmin.f32 %v146_v12, %v148_v13 }
  0xcf   :  { %v150_v15 = vrot.slane %v149_v14, 2 }
  0xd1   :  { %v151_v16 = vmin.f32 %v149_v14, %v150_v15 }
  0xd3   :  { %v152_v17 = vrot.slane %v151_v16, 1 }
  0xd5   :  { %v153_v18 = vmin.f32 %v151_v16, %v152_v17 }
  0xd7   :  { %vm155_vm10 = vcmp.eq.f32.partialorder %v141_v11, %v153_v18 }
  0xd8   :  { %v157_v20 = vsel %vm155_vm10, %v365_v19, 1073741824 }
  0xd9   :  { %v158_v21 = vsel %vm145_vm9, %v157_v20, 2147483647 }
  0xda   :  { %vm289_vm11 = vcmp.gt.s32.totalorder %v158_v21, 1073741824 }
  0xdb   :  { %v160_v22 = vsel %vm289_vm11, 1073741824, %v158_v21 }
  0xdc   :  { %v161_v23 = vrot.slane %v160_v22, 4 }
  0xde   :  { %vm162_vm12 = vcmp.lt.s32.totalorder %v160_v22, %v161_v23 }
  0xdf   :  { %v163_v24 = vsel %vm162_vm12, %v160_v22, %v161_v23 }
  0xe0   :  { %v164_v25 = vrot.slane %v163_v24, 2 }
  0xe2   :  { %vm165_vm13 = vcmp.lt.s32.totalorder %v163_v24, %v164_v25 }
  0xe3   :  { %v166_v26 = vsel %vm165_vm13, %v163_v24, %v164_v25 }
  0xe4   :  { %v167_v27 = vrot.slane %v166_v26, 1 }
  0xe6   :  { %vm168_vm14 = vcmp.lt.s32.totalorder %v166_v26, %v167_v27 }
  0xe7   :  { %v369_v28 = vsel %vm168_vm14, %v166_v26, %v167_v27 }
  0xe8   :  { %vm171_vm15 = vcmp.eq.s32.totalorder %v365_v19, %v369_v28 }
  0xe9   :  { %v173_v29 = vsel %vm171_vm15, inf, %v141_v11 }
  0xea   :  { %v174_v30 = vsel %vm145_vm9, %v173_v29, inf }
  0xeb   :  { %v176_v31 = vrot.slane %v174_v30, 4 }
  0xed   :  { %v177_v32 = vmin.f32 %v174_v30, %v176_v31 }
  0xef   :  { %v178_v33 = vrot.slane %v177_v32, 2 }
  0xf1   :  { %v179_v34 = vmin.f32 %v177_v32, %v178_v33 }
  0xf3   :  { %v180_v35 = vrot.slane %v179_v34, 1 }
  0xf5   :  { %v181_v36 = vmin.f32 %v179_v34, %v180_v35 }
  0xf7   :  { %vm183_vm0 = vcmp.eq.f32.partialorder %v173_v29, %v181_v36 }
  0xf8   :  { %v185_v37 = vsel %vm183_vm0, %v365_v19, 1073741824 }
  0xf9   :  { %v186_v38 = vsel %vm145_vm9, %v185_v37, 2147483647 }
  0xfa   :  { %vm292_vm1 = vcmp.gt.s32.totalorder %v186_v38, 1073741824 }
  0xfb   :  { %v188_v39 = vsel %vm292_vm1, 1073741824, %v186_v38 }
  0xfc   :  { %v189_v40 = vrot.slane %v188_v39, 4 }
  0xfe   :  { %vm190_vm2 = vcmp.lt.s32.totalorder %v188_v39, %v189_v40 }
  0xff   :  { %v191_v41 = vsel %vm190_vm2, %v188_v39, %v189_v40 }
 0x100   :  { %v192_v42 = vrot.slane %v191_v41, 2 }
 0x102   :  { %vm193_vm3 = vcmp.lt.s32.totalorder %v191_v41, %v192_v42 }
 0x103   :  { %v194_v43 = vsel %vm193_vm3, %v191_v41, %v192_v42 }
 0x104   :  { %v195_v44 = vrot.slane %v194_v43, 1 }
 0x106   :  { %vm196_vm4 = vcmp.lt.s32.totalorder %v194_v43, %v195_v44 }
 0x107   :  { %v197_v45 = vsel %vm196_vm4, %v194_v43, %v195_v44 }
 0x108   :  { %vm199_vm8 = vcmp.eq.s32.totalorder %v365_v19, %v197_v45  ;;  %v258_v15 = vsel %vm131_vm5, %v369_v28, %v197_v45 }
 0x109   :  { %v201_v46 = vsel %vm199_vm8, inf, %v173_v29 }
 0x10a   :  { %v202_v47 = vsel %vm145_vm9, %v201_v46, inf }
 0x10b   :  { %v204_v48 = vrot.slane %v202_v47, 4 }
 0x10d   :  { %v205_v49 = vmin.f32 %v202_v47, %v204_v48 }
 0x10f   :  { %v206_v50 = vrot.slane %v205_v49, 2 }
 0x111   :  { %v207_v51 = vmin.f32 %v205_v49, %v206_v50 }
 0x113   :  { %v208_v52 = vrot.slane %v207_v51, 1 }
 0x115   :  { %v209_v53 = vmin.f32 %v207_v51, %v208_v52 }
 0x117   :  { %vm211_vm10 = vcmp.eq.f32.partialorder %v201_v46, %v209_v53 }
 0x118   :  { %v213_v54 = vsel %vm211_vm10, %v365_v19, 1073741824 }
 0x119   :  { %v214_v55 = vsel %vm145_vm9, %v213_v54, 2147483647 }
 0x11a   :  { %vm295_vm11 = vcmp.gt.s32.totalorder %v214_v55, 1073741824 }
 0x11b   :  { %v216_v56 = vsel %vm295_vm11, 1073741824, %v214_v55 }
 0x11c   :  { %v217_v57 = vrot.slane %v216_v56, 4 }
 0x11e   :  { %vm218_vm12 = vcmp.lt.s32.totalorder %v216_v56, %v217_v57 }
 0x11f   :  { %v219_v58 = vsel %vm218_vm12, %v216_v56, %v217_v57 }
 0x120   :  { %v220_v59 = vrot.slane %v219_v58, 2 }
 0x122   :  { %vm221_vm13 = vcmp.lt.s32.totalorder %v219_v58, %v220_v59 }
 0x123   :  { %v222_v60 = vsel %vm221_vm13, %v219_v58, %v220_v59 }
 0x124   :  { %v223_v61 = vrot.slane %v222_v60, 1 }
 0x126   :  { %vm224_vm14 = vcmp.lt.s32.totalorder %v222_v60, %v223_v61 }
 0x127   :  { %v225_v62 = vsel %vm224_vm14, %v222_v60, %v223_v61 }
 0x128   :  { %vm227_vm15 = vcmp.eq.s32.totalorder %v365_v19, %v225_v62  ;;  %v259_v17 = vsel %vm133_vm6, %v258_v15, %v225_v62 }
 0x129   :  { %v229_v63 = vsel %vm227_vm15, inf, %v201_v46 }
 0x12a   :  { %v230_v0 = vsel %vm145_vm9, %v229_v63, inf }
 0x12b   :  { %v232_v1 = vrot.slane %v230_v0, 4 }
 0x12d   :  { %v233_v2 = vmin.f32 %v230_v0, %v232_v1 }
 0x12f   :  { %v234_v3 = vrot.slane %v233_v2, 2 }
 0x131   :  { %v235_v4 = vmin.f32 %v233_v2, %v234_v3 }
 0x133   :  { %v236_v5 = vrot.slane %v235_v4, 1 }
 0x135   :  { %v237_v6 = vmin.f32 %v235_v4, %v236_v5 }
 0x137   :  { %vm239_vm0 = vcmp.eq.f32.partialorder %v229_v63, %v237_v6 }
 0x138   :  { %v241_v7 = vsel %vm239_vm0, %v365_v19, 1073741824 }
 0x139   :  { %v242_v8 = vsel %vm145_vm9, %v241_v7, 2147483647 }
 0x13a   :  { %vm298_vm1 = vcmp.gt.s32.totalorder %v242_v8, 1073741824 }
 0x13b   :  { %v244_v9 = vsel %vm298_vm1, 1073741824, %v242_v8 }
 0x13c   :  { %v245_v10 = vrot.slane %v244_v9, 4 }
 0x13e   :  { %vm246_vm2 = vcmp.lt.s32.totalorder %v244_v9, %v245_v10 }
 0x13f   :  { %v247_v11 = vsel %vm246_vm2, %v244_v9, %v245_v10 }
 0x140   :  { %v248_v12 = vrot.slane %v247_v11, 2 }
 0x142   :  { %vm249_vm3 = vcmp.lt.s32.totalorder %v247_v11, %v248_v12 }
 0x143   :  { %v250_v13 = vsel %vm249_vm3, %v247_v11, %v248_v12 }
 0x144   :  { %v251_v14 = vrot.slane %v250_v13, 1 }
 0x146   :  { %vm252_vm4 = vcmp.lt.s32.totalorder %v250_v13, %v251_v14 }
 0x147   :  { %v253_v16 = vsel %vm252_vm4, %v250_v13, %v251_v14 }
 0x148   :  { %v260_v18 = vsel %vm135_vm7, %v259_v17, %v253_v16 }
 0x149   :  { %v261_v19 = vsel %vm145_vm9, %v260_v18, 1073741824 }
 0x14a   :  { %271 = vst [vmem:[#allocation4] sm:$0xf] %v261_v19 }
 0x14b   :  { %282 = dma.vmem_to_hbm [thread:$0]  %s278_s1, 64, %s280_s17, [#allocation5]  }
 0x14c   :  { %331 = dma.done.wait [#allocation5], 64  }
 0x14d   :  { %332 = vsyncadd [#allocation5], 4294967232 }
 0x14e   :  { %287 = vsyncpa [#allocation5], 1 }

</bundles_post_ra>
